<compile_context>
chip_gen: v7x
topology: tpu7x:2x2x1
jax: 0.10.0
libtpu: 0.0.40
codegen_flags: <defaults>
</compile_context>

<pallas_src>
import functools

import jax
import jax.numpy as jnp
from jax.experimental import pallas as pl
from jax.experimental.pallas import tpu as pltpu


# ----------------------------------------------------------------------------
# Kernel
# ----------------------------------------------------------------------------
def _msattention_kernel(x_ref, wqkv_ref, bqkv_ref, wp_ref, bp_ref, o_ref,
                        xc_ref, acc_ref, *, bt, seq_len, channels, head_dim,
                        compute_dtype, exp_dtype, approx_recip):
    """One (batch-tile, head) grid step.

    x_ref    : (bt, N, C)         input rows for this batch tile (same for all h)
    wqkv_ref : (1, C, 3*hd)       this head's fused QKV weight (Q pre-scaled)
    bqkv_ref : (1, 1, 3*hd)       this head's fused QKV bias   (Q pre-scaled)
    wp_ref   : (1, hd, C)         this head's slice of proj.weight.T
    bp_ref   : (1, C)             proj bias
    o_ref    : (bt, N, C)         output block (written on the last head)
    xc_ref   : (bt*N, C)          scratch: x flattened + cast once per batch tile
    acc_ref  : (bt*N, C) f32      scratch: output-projection accumulator
    """
    h = pl.program_id(1)
    n_heads = pl.num_programs(1)
    M = bt * seq_len

    # ---- once per batch tile: flatten batches and cast once (lane-dense) ----
    @pl.when(h == 0)
    def _():
        xc_ref[...] = x_ref[...].reshape(M, channels).astype(compute_dtype)

    x2 = xc_ref[...]                                           # (M, C)

    # ---- this head's fused QKV projection (qk scale folded into Q cols) ----
    qkv = jnp.dot(x2, wqkv_ref[0],
                  preferred_element_type=jnp.float32) + bqkv_ref[0]   # (M, 3*hd) f32
    qkv = qkv.astype(compute_dtype)                            # single cast, then slice
    q = qkv[:, :head_dim].reshape(bt, seq_len, head_dim)
    k = qkv[:, head_dim:2 * head_dim].reshape(bt, seq_len, head_dim)
    v = qkv[:, 2 * head_dim:].reshape(bt, seq_len, head_dim)

    # ---- attention, batched over the folded batch rows (no XLU transpose) ----
    s = jnp.einsum("bqd,bkd->bqk", q, k,
                   preferred_element_type=jnp.float32)         # (bt, N, N) f32
    s = s - jnp.max(s, axis=-1, keepdims=True)
    p = jnp.exp(s.astype(exp_dtype))                           # EUP; bf16 opt-in (v6e/v7x)
    row_sum = jnp.sum(p.astype(jnp.float32), axis=-1, keepdims=True)
    inv = pl.reciprocal(row_sum, approx=approx_recip)          # (bt, N, 1) f32
    ctx = jnp.einsum("bqk,bkd->bqd", p.astype(compute_dtype), v,
                     preferred_element_type=jnp.float32)       # (bt, N, hd) f32
    ctx = ctx * inv                                            # deferred softmax norm

    # ---- fused head-merge + output projection: (M, hd) @ (hd, C) ----
    contrib = jnp.dot(ctx.reshape(M, head_dim).astype(compute_dtype), wp_ref[0],
                      preferred_element_type=jnp.float32)      # (M, C) f32, lane-dense

    @pl.when(h == 0)
    def _():
        acc_ref[...] = contrib + bp_ref[...]

    @pl.when(h > 0)
    def _():
        acc_ref[...] = acc_ref[...] + contrib

    @pl.when(h == n_heads - 1)
    def _():
        o_ref[...] = acc_ref[...].reshape(o_ref.shape).astype(o_ref.dtype)


# ----------------------------------------------------------------------------
# Parameter preprocessing (layout plumbing, done once outside the kernel)
# ----------------------------------------------------------------------------
def _prepare_params(params, num_heads, compute_dtype):
    """PyTorch nn.Linear (out, in) weights -> per-head TPU-friendly layout."""
    C = params["wq"].shape[0]
    if C % num_heads != 0:
        raise ValueError(f"dim={C} not divisible by num_heads={num_heads}")
    hd = C // num_heads
    scale = hd ** (-0.5)

    def per_head_in_by_hd(w):               # (C_out, C_in) -> (H, C_in, hd)
        return w.reshape(num_heads, hd, C).transpose(0, 2, 1)

    wq = params["wq"] * scale               # fold qk scale into Q weights/bias
    wkv = params["wkv"]
    wk, wv = wkv[:C], wkv[C:]
    wqkv = jnp.concatenate(
        [per_head_in_by_hd(wq), per_head_in_by_hd(wk), per_head_in_by_hd(wv)],
        axis=-1).astype(compute_dtype)                          # (H, C, 3*hd)

    bq = params["bq"].reshape(-1) * scale
    bkv = params["bkv"].reshape(-1)
    bk, bv = bkv[:C], bkv[C:]
    bqkv = jnp.concatenate(
        [bq.reshape(num_heads, 1, hd), bk.reshape(num_heads, 1, hd),
         bv.reshape(num_heads, 1, hd)], axis=-1).astype(jnp.float32)  # (H, 1, 3*hd)

    # out = ctx @ wp.T + bp ; head h's ctx columns hit rows [h*hd:(h+1)*hd) of wp.T
    wp_h = params["wp"].T.reshape(num_heads, hd, C).astype(compute_dtype)  # (H, hd, C)
    bp = params["bp"].reshape(1, C).astype(jnp.float32)                    # (1, C)
    return wqkv, bqkv, wp_h, bp


def _pick_batch_tile(B, N):
    """Fold batch rows per grid step until the projection matmuls have ~128 rows."""
    target = max(1, -(-128 // N))           # ceil(128 / N)
    bt = 1
    for cand in range(2, B + 1):
        if B % cand == 0 and cand <= target:
            bt = cand
    return bt


def _vmem_limit_bytes(bt, N, C, hd, x_itemsize, cd_itemsize):
    """Working-set-derived scoped-VMEM budget, capped by physical VMEM - headroom."""
    f32 = 4
    M = bt * N
    io = 2 * M * C * x_itemsize                                  # x block + out block
    weights = (C * 3 * hd + hd * C) * cd_itemsize + 3 * hd * f32 + C * f32
    scratch = M * C * (cd_itemsize + f32)                        # xc + acc
    interm = (M * 3 * hd * (f32 + cd_itemsize)                   # qkv f32 + cast
              + 3 * bt * N * N * f32                             # scores/probs (+slack)
              + M * hd * f32 + M * C * f32)                      # ctx + contrib
    ws = 2 * io + 2 * weights + scratch + interm                 # double-buffered io/weights
    want = max(int(2 * ws), 32 * 1024 * 1024)

    try:
        cap = int(getattr(pltpu.get_tpu_info(), "vmem_capacity_bytes",
                          64 * 1024 * 1024))
    except Exception:                                            # pragma: no cover
        cap = 64 * 1024 * 1024                                   # conservative (v7x)
    headroom = 16 * 1024 * 1024
    return int(max(min(want, cap - headroom), 16 * 1024 * 1024))


# ----------------------------------------------------------------------------
# Public wrapper
# ----------------------------------------------------------------------------
def msattention_pallas(x, params, num_heads, compute_dtype=jnp.bfloat16,
                       exp_dtype=None, batch_tile=None):
    """x: (B, N, C); params in PyTorch nn.Linear layout. Self-attention, mask=None.

    compute_dtype: MXU operand dtype (bf16 is the perf path on every TPU gen;
                   f32 is correctness-only — on v5e it lowers to multi-pass
                   bf16 emulation).
    exp_dtype:     dtype for the softmax exp.  Default f32 (safe everywhere).
                   On v6e/v7x the kernel is EUP(exp)-bound at small head_dim,
                   so passing jnp.bfloat16 there is ~2x on the binding unit.
    """
    B, N, C = x.shape
    if C % num_heads != 0:
        raise ValueError(f"dim={C} not divisible by num_heads={num_heads}")
    head_dim = C // num_heads
    if exp_dtype is None:
        exp_dtype = jnp.float32
    # Exact reciprocal on the f32 correctness path; EUP approx on the perf path.
    approx_recip = jnp.dtype(compute_dtype) != jnp.dtype(jnp.float32)

    wqkv, bqkv, wp_h, bp = _prepare_params(params, num_heads, compute_dtype)

    bt = batch_tile if batch_tile is not None else _pick_batch_tile(B, N)
    assert B % bt == 0, "batch_tile must divide batch"
    grid = (B // bt, num_heads)

    kernel = functools.partial(
        _msattention_kernel, bt=bt, seq_len=N, channels=C, head_dim=head_dim,
        compute_dtype=compute_dtype, exp_dtype=exp_dtype,
        approx_recip=approx_recip)

    vmem_bytes = _vmem_limit_bytes(bt, N, C, head_dim,
                                   jnp.dtype(x.dtype).itemsize,
                                   jnp.dtype(compute_dtype).itemsize)

    # x / out index maps are constant across the head axis -> no re-DMA per head.
    # Per-head weight blocks (small) are double-buffered and pipelined across h.
    return pl.pallas_call(
        kernel,
        out_shape=jax.ShapeDtypeStruct((B, N, C), x.dtype),
        grid_spec=pltpu.PrefetchScalarGridSpec(
            num_scalar_prefetch=0,
            grid=grid,
            in_specs=[
                pl.BlockSpec((bt, N, C), lambda b, h: (b, 0, 0)),            # x
                pl.BlockSpec((1, C, 3 * head_dim), lambda b, h: (h, 0, 0)),  # wqkv_h
                pl.BlockSpec((1, 1, 3 * head_dim), lambda b, h: (h, 0, 0)),  # bqkv_h
                pl.BlockSpec((1, head_dim, C), lambda b, h: (h, 0, 0)),      # wp_h
                pl.BlockSpec((1, C), lambda b, h: (0, 0)),                   # bp
            ],
            out_specs=pl.BlockSpec((bt, N, C), lambda b, h: (b, 0, 0)),
            scratch_shapes=[
                pltpu.VMEM((bt * N, C), compute_dtype),   # x cast-once buffer
                pltpu.VMEM((bt * N, C), jnp.float32),     # f32 out-proj accumulator
            ],
        ),
        compiler_params=pltpu.CompilerParams(
            dimension_semantics=("parallel", "arbitrary"),
            vmem_limit_bytes=vmem_bytes),
    )(x, wqkv, bqkv, wp_h, bp)


# ----------------------------------------------------------------------------
# Pure-JAX reference (mirrors the PyTorch forward with attn_kv=None, mask=None)
# ----------------------------------------------------------------------------
def msattention_ref(x, params, num_heads):
    B, N, C = x.shape
    head_dim = C // num_heads
    scale = head_dim ** (-0.5)

    q = x @ params["wq"].T + params["bq"]            # (B, N, C)
    kv = x @ params["wkv"].T + params["bkv"]         # (B, N, 2C)
    k, v = kv[..., :C], kv[..., C:]

    def split_heads(t):                              # (B, N, C) -> (B, H, N, hd)
        return t.reshape(B, N, num_heads, head_dim).transpose(0, 2, 1, 3)

    qh, kh, vh = split_heads(q) * scale, split_heads(k), split_heads(v)
    attn = jnp.einsum("bhqd,bhkd->bhqk", qh, kh)
    attn = jax.nn.softmax(attn, axis=-1)
    ctx = jnp.einsum("bhqk,bhkd->bhqd", attn, vh)    # (B, H, N, hd)
    ctx = ctx.transpose(0, 2, 1, 3).reshape(B, N, C)  # 'b h l hd -> b l (h hd)'
    return ctx @ params["wp"].T + params["bp"]


def init_params(key, dim):
    """Deterministic synthetic parameters (PyTorch nn.Linear layout: (out, in))."""
    ks = jax.random.split(key, 6)
    s = 0.02
    return {
        "wq": s * jax.random.normal(ks[0], (dim, dim), jnp.float32),
        "bq": s * jax.random.normal(ks[1], (1, dim), jnp.float32),
        "wkv": s * jax.random.normal(ks[2], (2 * dim, dim), jnp.float32),
        "bkv": s * jax.random.normal(ks[3], (1, 2 * dim), jnp.float32),
        "wp": s * jax.random.normal(ks[4], (dim, dim), jnp.float32),
        "bp": s * jax.random.normal(ks[5], (1, dim), jnp.float32),
    }


if __name__ == "__main__":
    # Lane-dense small shape: C = 128 (multiple of 128 lanes), N multiple of 8.
    # With N=16 the wrapper folds both batch rows into one tile (bt=2), so the
    # projection matmuls see 32 rows instead of 16.
    B, N, dim, num_heads = 2, 16, 128, 4

    key = jax.random.PRNGKey(0)
    k_x, k_p = jax.random.split(key)
    x = jax.random.normal(k_x, (B, N, dim), jnp.float32)
    params = init_params(k_p, dim)

    ref = msattention_ref(x, params, num_heads)

    # 1) correctness path (f32 operands, exact reciprocal): tight check.
    out_f32 = msattention_pallas(x, params, num_heads, compute_dtype=jnp.float32)
    out_f32 = jax.block_until_ready(out_f32)
    assert out_f32.shape == (B, N, dim)
    assert jnp.allclose(out_f32, ref, atol=3e-3, rtol=3e-3), "f32 mismatch vs reference"

    # 2) performance path (bf16 matmul operands, f32 accumulation + f32 softmax).
    out_bf16 = msattention_pallas(x, params, num_heads, compute_dtype=jnp.bfloat16)
    out_bf16 = jax.block_until_ready(out_bf16)
    assert out_bf16.shape == (B, N, dim)
    assert jnp.allclose(out_bf16, ref, atol=2e-2, rtol=2e-2), "bf16 mismatch vs reference"

    print("KERNEL_OK")
</pallas_src>

<mosaic_0001>
module attributes {stable_mosaic.version = 11 : i64} {
  func.func @_msattention_kernel(%arg0: i32, %arg1: i32, %arg2: memref<2x16x128xf32, #tpu.memory_space<vmem>>, %arg3: memref<1x128x96xf32, #tpu.memory_space<vmem>>, %arg4: memref<1x1x96xf32, #tpu.memory_space<vmem>>, %arg5: memref<1x32x128xf32, #tpu.memory_space<vmem>>, %arg6: memref<1x128xf32, #tpu.memory_space<vmem>>, %arg7: memref<2x16x128xf32, #tpu.memory_space<vmem>>, %arg8: memref<32x128xf32, #tpu.memory_space<vmem>>, %arg9: memref<32x128xf32, #tpu.memory_space<vmem>>) attributes {dimension_semantics = [#tpu.dimension_semantics<parallel>, #tpu.dimension_semantics<arbitrary>], iteration_bounds = array<i64: 1, 4>, scalar_prefetch = 0 : i64, scratch_operands = 2 : i64, tpu.core_type = #tpu.core_type<tc>, window_params = [{transform_indices = @transform_0, window_bounds = array<i64: 2, 16, 128>}, {transform_indices = @transform_1, window_bounds = array<i64: 1, 128, 96>}, {transform_indices = @transform_2, window_bounds = array<i64: 1, 1, 96>}, {transform_indices = @transform_3, window_bounds = array<i64: 1, 32, 128>}, {pipeline_mode = #tpu.pipeline_mode<synchronous>, transform_indices = @transform_4, window_bounds = array<i64: 1, 128>}, {transform_indices = @transform_5, window_bounds = array<i64: 2, 16, 128>}]} {
    %c0_i32 = arith.constant 0 : i32
    %0 = arith.cmpi eq, %arg1, %c0_i32 : i32
    %1 = arith.extui %0 : i1 to i32
    %c0_i32_0 = arith.constant 0 : i32
    %2 = arith.cmpi ne, %1, %c0_i32_0 : i32
    scf.if %2 {
      %c0_21 = arith.constant 0 : index
      %c0_22 = arith.constant 0 : index
      %c0_23 = arith.constant 0 : index
      %42 = vector.load %arg2[%c0_21, %c0_22, %c0_23] : memref<2x16x128xf32, #tpu.memory_space<vmem>>, vector<2x16x128xf32>
      %43 = vector.shape_cast %42 : vector<2x16x128xf32> to vector<32x128xf32>
      %c0_24 = arith.constant 0 : index
      %c0_25 = arith.constant 0 : index
      %44 = vector.load %arg8[%c0_24, %c0_25] : memref<32x128xf32, #tpu.memory_space<vmem>>, vector<32x128xf32>
      tpu.vector_store %arg8[%c0_24, %c0_25], %43 {strides = array<i32>} : memref<32x128xf32, #tpu.memory_space<vmem>>, vector<32x128xf32>,
    } else {
    }
    %c0 = arith.constant 0 : index
    %c0_1 = arith.constant 0 : index
    %3 = vector.load %arg8[%c0, %c0_1] : memref<32x128xf32, #tpu.memory_space<vmem>>, vector<32x128xf32>
    %c0_2 = arith.constant 0 : index
    %c0_3 = arith.constant 0 : index
    %c0_4 = arith.constant 0 : index
    %4 = vector.load %arg3[%c0_2, %c0_3, %c0_4] : memref<1x128x96xf32, #tpu.memory_space<vmem>>, vector<1x128x96xf32>
    %5 = vector.shape_cast %4 : vector<1x128x96xf32> to vector<128x96xf32>
    %cst = arith.constant dense<0.000000e+00> : vector<32x96xf32>
    %6 = tpu.matmul %3, %5, %cst {dimension_numbers = #tpu.dot_dimension_numbers<[1], [0], [0], [1], [0, 0, 1, 1], [], []>} : vector<32x128xf32>, vector<128x96xf32>, vector<32x96xf32> -> vector<32x96xf32>
    %c0_5 = arith.constant 0 : index
    %c0_6 = arith.constant 0 : index
    %c0_7 = arith.constant 0 : index
    %7 = vector.load %arg4[%c0_5, %c0_6, %c0_7] : memref<1x1x96xf32, #tpu.memory_space<vmem>>, vector<1x1x96xf32>
    %8 = vector.shape_cast %7 : vector<1x1x96xf32> to vector<1x96xf32>
    %9 = vector.broadcast %8 : vector<1x96xf32> to vector<32x96xf32>
    %10 = arith.addf %6, %9 : vector<32x96xf32>
    %11 = vector.extract_strided_slice %10 {offsets = [0, 0], sizes = [32, 32], strides = [1, 1]} : vector<32x96xf32> to vector<32x32xf32>
    %12 = vector.shape_cast %11 : vector<32x32xf32> to vector<2x16x32xf32>
    %13 = vector.extract_strided_slice %10 {offsets = [0, 32], sizes = [32, 32], strides = [1, 1]} : vector<32x96xf32> to vector<32x32xf32>
    %14 = vector.shape_cast %13 : vector<32x32xf32> to vector<2x16x32xf32>
    %15 = vector.extract_strided_slice %10 {offsets = [0, 64], sizes = [32, 32], strides = [1, 1]} : vector<32x96xf32> to vector<32x32xf32>
    %16 = vector.shape_cast %15 : vector<32x32xf32> to vector<2x16x32xf32>
    "tpu.trace_start"() <{level = 10 : i32, message = "bqd,bkd->bqk"}> : () -> ()
    %cst_8 = arith.constant dense<0.000000e+00> : vector<2x16x16xf32>
    %17 = tpu.matmul %12, %14, %cst_8 {dimension_numbers = #tpu.dot_dimension_numbers<[2], [2], [1], [1], [0, 0, 0, 1, 1, 1], [0], [0]>} : vector<2x16x32xf32>, vector<2x16x32xf32>, vector<2x16x16xf32> -> vector<2x16x16xf32>
    "tpu.trace_stop"() : () -> ()
    %cst_9 = arith.constant dense<0xFF800000> : vector<2x16xf32>
    %18 = vector.multi_reduction <maximumf>, %17, %cst_9 [2] : vector<2x16x16xf32> to vector<2x16xf32>
    %19 = vector.shape_cast %18 : vector<2x16xf32> to vector<2x16x1xf32>
    %20 = vector.broadcast %19 : vector<2x16x1xf32> to vector<2x16x16xf32>
    %21 = arith.subf %17, %20 : vector<2x16x16xf32>
    %22 = math.exp %21 : vector<2x16x16xf32>
    %cst_10 = arith.constant dense<0.000000e+00> : vector<2x16xf32>
    %23 = vector.multi_reduction <add>, %22, %cst_10 [2] : vector<2x16x16xf32> to vector<2x16xf32>
    %24 = vector.shape_cast %23 : vector<2x16xf32> to vector<2x16x1xf32>
    %25 = tpu.reciprocal %24 : vector<2x16x1xf32> -> vector<2x16x1xf32>
    "tpu.trace_start"() <{level = 10 : i32, message = "bqk,bkd->bqd"}> : () -> ()
    %cst_11 = arith.constant dense<0.000000e+00> : vector<2x16x32xf32>
    %26 = tpu.matmul %22, %16, %cst_11 {dimension_numbers = #tpu.dot_dimension_numbers<[2], [1], [1], [2], [0, 0, 0, 1, 1, 2], [0], [0]>} : vector<2x16x16xf32>, vector<2x16x32xf32>, vector<2x16x32xf32> -> vector<2x16x32xf32>
    "tpu.trace_stop"() : () -> ()
    %27 = vector.broadcast %25 : vector<2x16x1xf32> to vector<2x16x32xf32>
    %28 = arith.mulf %26, %27 : vector<2x16x32xf32>
    %29 = vector.shape_cast %28 : vector<2x16x32xf32> to vector<32x32xf32>
    %c0_12 = arith.constant 0 : index
    %c0_13 = arith.constant 0 : index
    %c0_14 = arith.constant 0 : index
    %30 = vector.load %arg5[%c0_12, %c0_13, %c0_14] : memref<1x32x128xf32, #tpu.memory_space<vmem>>, vector<1x32x128xf32>
    %31 = vector.shape_cast %30 : vector<1x32x128xf32> to vector<32x128xf32>
    %cst_15 = arith.constant dense<0.000000e+00> : vector<32x128xf32>
    %32 = tpu.matmul %29, %31, %cst_15 {dimension_numbers = #tpu.dot_dimension_numbers<[1], [0], [0], [1], [0, 0, 1, 1], [], []>} : vector<32x32xf32>, vector<32x128xf32>, vector<32x128xf32> -> vector<32x128xf32>
    %c0_i32_16 = arith.constant 0 : i32
    %33 = arith.cmpi eq, %arg1, %c0_i32_16 : i32
    %34 = arith.extui %33 : i1 to i32
    %c0_i32_17 = arith.constant 0 : i32
    %35 = arith.cmpi ne, %34, %c0_i32_17 : i32
    scf.if %35 {
      %c0_21 = arith.constant 0 : index
      %c0_22 = arith.constant 0 : index
      %42 = vector.load %arg6[%c0_21, %c0_22] : memref<1x128xf32, #tpu.memory_space<vmem>>, vector<1x128xf32>
      %43 = vector.broadcast %42 : vector<1x128xf32> to vector<32x128xf32>
      %44 = arith.addf %32, %43 : vector<32x128xf32>
      %c0_23 = arith.constant 0 : index
      %c0_24 = arith.constant 0 : index
      %45 = vector.load %arg9[%c0_23, %c0_24] : memref<32x128xf32, #tpu.memory_space<vmem>>, vector<32x128xf32>
      tpu.vector_store %arg9[%c0_23, %c0_24], %44 {strides = array<i32>} : memref<32x128xf32, #tpu.memory_space<vmem>>, vector<32x128xf32>,
    } else {
    }
    %c0_i32_18 = arith.constant 0 : i32
    %36 = arith.cmpi sgt, %arg1, %c0_i32_18 : i32
    %37 = arith.extui %36 : i1 to i32
    %c0_i32_19 = arith.constant 0 : i32
    %38 = arith.cmpi ne, %37, %c0_i32_19 : i32
    scf.if %38 {
      %c0_21 = arith.constant 0 : index
      %c0_22 = arith.constant 0 : index
      %42 = vector.load %arg9[%c0_21, %c0_22] : memref<32x128xf32, #tpu.memory_space<vmem>>, vector<32x128xf32>
      %43 = arith.addf %42, %32 : vector<32x128xf32>
      %c0_23 = arith.constant 0 : index
      %c0_24 = arith.constant 0 : index
      %44 = vector.load %arg9[%c0_23, %c0_24] : memref<32x128xf32, #tpu.memory_space<vmem>>, vector<32x128xf32>
      tpu.vector_store %arg9[%c0_23, %c0_24], %43 {strides = array<i32>} : memref<32x128xf32, #tpu.memory_space<vmem>>, vector<32x128xf32>,
    } else {
    }
    %c3_i32 = arith.constant 3 : i32
    %39 = arith.cmpi eq, %arg1, %c3_i32 : i32
    %40 = arith.extui %39 : i1 to i32
    %c0_i32_20 = arith.constant 0 : i32
    %41 = arith.cmpi ne, %40, %c0_i32_20 : i32
    scf.if %41 {
      %c0_21 = arith.constant 0 : index
      %c0_22 = arith.constant 0 : index
      %42 = vector.load %arg9[%c0_21, %c0_22] : memref<32x128xf32, #tpu.memory_space<vmem>>, vector<32x128xf32>
      %43 = vector.shape_cast %42 : vector<32x128xf32> to vector<2x16x128xf32>
      %c0_23 = arith.constant 0 : index
      %c0_24 = arith.constant 0 : index
      %c0_25 = arith.constant 0 : index
      %44 = vector.load %arg7[%c0_23, %c0_24, %c0_25] : memref<2x16x128xf32, #tpu.memory_space<vmem>>, vector<2x16x128xf32>
      tpu.vector_store %arg7[%c0_23, %c0_24, %c0_25], %43 {strides = array<i32>} : memref<2x16x128xf32, #tpu.memory_space<vmem>>, vector<2x16x128xf32>,
    } else {
    }
    return
  }
  func.func @transform_0(%arg0: i32, %arg1: i32) -> (i32, i32, i32) {
    %c0_i32 = arith.constant 0 : i32
    %c0_i32_0 = arith.constant 0 : i32
    %c0_i32_1 = arith.constant 0 : i32
    return %arg0, %c0_i32, %c0_i32_0 : i32, i32, i32
  }
  func.func @transform_1(%arg0: i32, %arg1: i32) -> (i32, i32, i32) {
    %c0_i32 = arith.constant 0 : i32
    %c0_i32_0 = arith.constant 0 : i32
    %c0_i32_1 = arith.constant 0 : i32
    return %arg1, %c0_i32, %c0_i32_0 : i32, i32, i32
  }
  func.func @transform_2(%arg0: i32, %arg1: i32) -> (i32, i32, i32) {
    %c0_i32 = arith.constant 0 : i32
    %c0_i32_0 = arith.constant 0 : i32
    %c0_i32_1 = arith.constant 0 : i32
    return %arg1, %c0_i32, %c0_i32_0 : i32, i32, i32
  }
  func.func @transform_3(%arg0: i32, %arg1: i32) -> (i32, i32, i32) {
    %c0_i32 = arith.constant 0 : i32
    %c0_i32_0 = arith.constant 0 : i32
    %c0_i32_1 = arith.constant 0 : i32
    return %arg1, %c0_i32, %c0_i32_0 : i32, i32, i32
  }
  func.func @transform_4(%arg0: i32, %arg1: i32) -> (i32, i32) {
    %c0_i32 = arith.constant 0 : i32
    %c0_i32_0 = arith.constant 0 : i32
    %c0_i32_1 = arith.constant 0 : i32
    return %c0_i32, %c0_i32_0 : i32, i32
  }
  func.func @transform_5(%arg0: i32, %arg1: i32) -> (i32, i32, i32) {
    %c0_i32 = arith.constant 0 : i32
    %c0_i32_0 = arith.constant 0 : i32
    %c0_i32_1 = arith.constant 0 : i32
    return %arg0, %c0_i32, %c0_i32_0 : i32, i32, i32
  }
}

</mosaic_0001>

<bundles_post_ra>
// kernel: tpu_custom_call.1
= control target key start
LH: loop header
LB: loop body
LE: loop exit
PB: predicated region body
PF: predicated region fallthrough
CT: control target
= control target key end

     0   :  { %10 = vsyncpa [#allocation5], 0  ;;  %s1437_s18 = smov 0   ;;  %s1439_s19 = smov 0   ;;  %s1584_s0 = inlined_call_operand.vmem [shape: f32[2,16,128], index: 0, kind: input, shape index: {}]   ;;  %s1585_s1 = inlined_call_operand.vmem [shape: f32[4,128,96], index: 1, kind: input, shape index: {}]   ;;  %s1586_s2 = inlined_call_operand.vmem [shape: f32[4,1,96], index: 2, kind: input, shape index: {}]   ;;  %s1587_s3 = inlined_call_operand.vmem [shape: f32[4,32,128], index: 3, kind: input, shape index: {}]   ;;  %s1588_s4 = inlined_call_operand.vmem [shape: f32[1,128], index: 4, kind: input, shape index: {}]   ;;  %s1589_s5 = inlined_call_operand.hbm [shape: f32[2,16,128], index: 5, kind: output, shape index: {}]  }
   0x1   :  { %s1441_s20 = smov 0  }
   0x2 LB: > { %s1056_s21 = sadd.s32 4294967295, %s1400_s20   ;;  %s25_s22 = sadd.s32 1, %s1396_s19  ;;  %s1400_s20 = sphi %s1441_s20, %s16_s20   ;;  %s1396_s19 = sphi %s1439_s19, %s1592_s19   ;;  %s1392_s18 = sphi %s1437_s18, %s1591_s18  }
   0x3   : > { %p26_p0 = scmp.ge.s32.totalorder %s25_s22, 4  ;;  %p1060_p1 = scmp.ge.s32.totalorder %s1400_s20, 1 }
   0x4   : > { %p230_p2 = scmp.lt.s32.totalorder %s1400_s20, 5 }
   0x5   : > { %s1594_s22 = smov (%p26_p0, %s25_s22), 0 }
   0x6   : > { %p231_p3 = pnand %p1060_p1, %p230_p2 }
   0x7   : > { %p274_p4 = scmp.lt.s32.totalorder (!%p231_p3), %s1392_s18, 3  ;;  %p1065_p5 = scmp.ne.s32.totalorder (!%p231_p3), %s1392_s18, 0 }
   0x8   : > { %234 = sbr.rel (%p231_p3) target bundleno = 1259 (0x4eb), region = 40 }
   0xf   : > { %s1460_s23 = scalar_select %p274_p4, %s1392_s18, 3 }
  0x10   : > { %291 = sbr.rel (%p1065_p5) target bundleno = 23 (0x17), region = 44  ;;  %v292_v0 = vld [vmem:[%s1584_s0] sm:$0xff] (!%p1065_p5)  ;;  %v293_v1 = vld [vmem:[%s1584_s0 + $0x8] sm:$0xff] (!%p1065_p5)  ;;  %v294_v2 = vld [vmem:[%s1584_s0 + $0x10] sm:$0xff] (!%p1065_p5) }
  0x11   : > { %s1091_s24 = sshll.u32 %s1460_s23, 7  ;;  %s281_s27 = scalar_lea.vmem %s1586_s2, %s1460_s23  ;;  %296 = vst [vmem:[#allocation2] sm:$0xff] (!%p1065_p5), %v292_v0  ;;  %297 = vst [vmem:[#allocation2 + $0x8] sm:$0xff] (!%p1065_p5), %v293_v1  ;;  %v295_v3 = vld [vmem:[%s1584_s0 + $0x18] sm:$0xff] (!%p1065_p5) }
  0x12   : > { %s1470_s30 = scalar_lea.vmem %s1585_s1, %s1091_s24  ;;  %s1092_s6 = sshll.u32 %s1460_s23, 5  ;;  %298 = vst [vmem:[#allocation2 + $0x10] sm:$0xff] (!%p1065_p5), %v294_v2  ;;  %299 = vst [vmem:[#allocation2 + $0x18] sm:$0xff] (!%p1065_p5), %v295_v3 }
  0x13   : > { %s1476_s9 = scalar_lea.vmem %s1587_s3, %s1092_s6 }
  0x17 PF: > { %v304_v4 = vld [vmem:[%s1470_s30] sm:$0xff]  ;;  %v305_v5 = vld [vmem:[%s1470_s30 + $0x8] sm:$0xff]  ;;  %v306_v6 = vld [vmem:[%s1470_s30 + $0x10] sm:$0xff]  ;;  %vm418_vm0 = vcmask 261120   ;;  %s1402_s26 = smov 96   ;;  %vm591_vm2 = vcmask 130048  }
  0x18   : > { %v1217_v7 = vpack.c.bf16 %v305_v5, %v304_v4  ;;  %v307_v8 = vld [vmem:[%s1470_s30 + $0x18] sm:$0xff]  ;;  %v308_v10 = vld [vmem:[%s1470_s30 + $0x20] sm:$0xff]  ;;  %v309_v11 = vld [vmem:[%s1470_s30 + $0x28] sm:$0xff]  ;;  %s1403_s23 = smov 64  }
  0x19   : > { %v1221_v9 = vpack.c.bf16 %v307_v8, %v306_v6  ;;  %v1225_v12 = vpack.c.bf16 %v309_v11, %v308_v10  ;;  %v300_v13 = vld [vmem:[#allocation2] sm:$0xff]  ;;  %v310_v14 = vld [vmem:[%s1470_s30 + $0x30] sm:$0xff]  ;;  %v311_v15 = vld [vmem:[%s1470_s30 + $0x38] sm:$0xff] }
  0x1a   : > { %1218 = vmatprep.subr.bf16.mxu0 %v1217_v7  ;;  %1169 = vmatprep.mubr.f32.mxu0 %v300_v13  ;;  %v1229_v16 = vpack.c.bf16 %v311_v15, %v310_v14  ;;  %v312_v17 = vld [vmem:[%s1470_s30 + $0x40] sm:$0xff]  ;;  %v313_v18 = vld [vmem:[%s1470_s30 + $0x48] sm:$0xff]  ;;  %v314_v20 = vld [vmem:[%s1470_s30 + $0x50] sm:$0xff] }
  0x1b   : > { %1220 = vmatpush3.bf16.msra.mxu0 %v1217_v7  ;;  %v1233_v19 = vpack.c.bf16 %v313_v18, %v312_v17  ;;  %v315_v21 = vld [vmem:[%s1470_s30 + $0x58] sm:$0xff]  ;;  %v316_v23 = vld [vmem:[%s1470_s30 + $0x60] sm:$0xff]  ;;  %v317_v24 = vld [vmem:[%s1470_s30 + $0x68] sm:$0xff] }
  0x1c   : > { %1222 = vmatprep.subr.bf16.mxu0 %v1221_v9  ;;  %v1237_v22 = vpack.c.bf16 %v315_v21, %v314_v20  ;;  %v1241_v25 = vpack.c.bf16 %v317_v24, %v316_v23  ;;  %v318_v26 = vld [vmem:[%s1470_s30 + $0x70] sm:$0xff]  ;;  %v319_v27 = vld [vmem:[%s1470_s30 + $0x78] sm:$0xff]  ;;  %v301_v29 = vld [vmem:[#allocation2 + $0x8] sm:$0xff] }
  0x1d   : > { %v1245_v28 = vpack.c.bf16 %v319_v27, %v318_v26  ;;  %v302_v30 = vld [vmem:[#allocation2 + $0x10] sm:$0xff]  ;;  %v303_v31 = vld [vmem:[#allocation2 + $0x18] sm:$0xff]  ;;  %v1066_v32 = vld [vmem:[%s281_s27] ss:$0 sm:$0xff] }
  0x1e   : > { %vm1250_vm1 = vmpackc.low %vm418_vm0, %vm418_vm0  ;;  %v810_v23 = vld [vmem:[%s1476_s9] sm:$0xff]  ;;  %v811_v24 = vld [vmem:[%s1476_s9 + $0x8] sm:$0xff] }
  0x1f   : > { %1224 = vmatpush3.bf16.msra.mxu0 %v1221_v9  ;;  %v812_v26 = vld [vmem:[%s1476_s9 + $0x10] sm:$0xff]  ;;  %v813_v27 = vld [vmem:[%s1476_s9 + $0x18] sm:$0xff] }
  0x20   : > { %1226 = vmatprep.subr.bf16.mxu0 %v1225_v12 }
  0x23   : > { %1228 = vmatpush3.bf16.msra.mxu0 %v1225_v12 }
  0x24   : > { %1230 = vmatprep.subr.bf16.mxu0 %v1229_v16 }
  0x27   : > { %1232 = vmatpush3.bf16.msra.mxu0 %v1229_v16 }
  0x28   : > { %1234 = vmatprep.subr.bf16.mxu0 %v1233_v19 }
  0x2b   : > { %1236 = vmatpush3.bf16.msra.mxu0 %v1233_v19 }
  0x2c   : > { %1238 = vmatprep.subr.bf16.mxu0 %v1237_v22 }
  0x2f   : > { %1240 = vmatpush3.bf16.msra.mxu0 %v1237_v22 }
  0x30   : > { %1242 = vmatprep.subr.bf16.mxu0 %v1241_v25 }
  0x33   : > { %1244 = vmatpush3.bf16.msra.mxu0 %v1241_v25  ;;  %v1269_v25 = vpack.c.bf16 %v811_v24, %v810_v23 }
  0x34   : > { %1246 = vmatprep.subr.bf16.mxu0 %v1245_v28 }
  0x37   : > { %1248 = vmatpush3.bf16.msra.mxu0 %v1245_v28  ;;  %v1273_v28 = vpack.c.bf16 %v813_v27, %v812_v26 }
  0x3a   : > { %1170 = vmatmul.mubr.f32.vlgmr.msra.gmra.mrb[0].mxu0 %v301_v29 }
  0x3b   : > { %1172 = vmatprep.mubr.f32.mxu0 %v302_v30 }
  0x3e   : > { %1173 = vmatmul.mubr.f32.gmra.mrb[2].mxu0 %v303_v31 }
 0x10d   : > { %v1171_v33 = vpop.f32.mrb[0].mxu0 }
 0x10e   : > { %v399_v34 = vadd.f32 %v1171_v33, %v1066_v32  ;;  %v393_v35 = vpop.f32.mrb[1].mxu0 }
 0x10f   : > { %v394_v36 = vadd.f32 %v1066_v32, %v393_v35 }
 0x111   : > { %1179 = vmatprep.mubr.msk.f32.mxu1 %vm418_vm0, %v394_v36  ;;  %v1312_v37 = vpack.i.bf16 %v399_v34, %v394_v36  ;;  %v1174_v38 = vpop.f32.mrb[2].mxu0 }
 0x112   : > { %v409_v39 = vadd.f32 %v1174_v38, %v1066_v32  ;;  %v403_v40 = vpop.f32.mrb[3].mxu0 }
 0x113   : > { %1313 = vrot.lane.b32.xlu0 %v1312_v37, %s1402_s26  ;;  %v404_v41 = vadd.f32 %v1066_v32, %v403_v40 }
 0x115   : > { %v1317_v42 = vpack.i.bf16 %v409_v39, %v404_v41 }
 0x117   : > { %1318 = vrot.lane.b32.xlu0 %v1317_v42, %s1402_s26 }
 0x185   : > { %v1314_v43 = vpop.permute.xlu0 %1313 }
 0x186   : > { %v1316_v44 = vunpack.i.h.bf16 %v1314_v43  ;;  %v1315_v45 = vunpack.i.l.bf16 %v1314_v43 }
 0x188   : > { %v1249_v46 = vpack.c.bf16 %v1316_v44, %v1315_v45 }
 0x189   : > { %v1319_v47 = vpop.permute.xlu0 %1318 }
 0x18a   : > { %1251 = vmatprep.subr.msk.bf16.mxu1 %vm1250_vm1, %v1249_v46  ;;  %v1321_v48 = vunpack.i.h.bf16 %v1319_v47  ;;  %v1320_v49 = vunpack.i.l.bf16 %v1319_v47 }
 0x18b   : > { %1254 = vmatpush3.bf16.xpose.msk.msra.mxu1 %vm1250_vm1, %v1249_v46 }
 0x18c   : > { %v1255_v50 = vpack.c.bf16 %v1321_v48, %v1320_v49  ;;  %v1084_v49 = vld [vmem:[%s1588_s4] ss:$0 sm:$0xff] (!%p1065_p5) }
 0x18e   : > { %1257 = vmatprep.subr.msk.bf16.mxu1 %vm1250_vm1, %v1255_v50 }
 0x192   : > { %1180 = vmatmul.mubr.msk.f32.vlgmr.msra.gmra.mrb[0].mxu1 %vm418_vm0, %v399_v34 }
 0x193   : > { %1260 = vmatpush3.bf16.xpose.msk.msra.mxu1 %vm1250_vm1, %v1255_v50  ;;  %1186 = vmatprep.mubr.msk.f32.mxu1 %vm418_vm0, %v404_v41 }
 0x19a   : > { %1187 = vmatmul.mubr.msk.f32.vlgmr.msra.gmra.mrb[2].mxu1 %vm418_vm0, %v409_v39 }
 0x265   : > { %v1181_v51 = vpop.f32.mrb[0].mxu1 }
 0x266   : > { %v493_v52 = vpop.f32.mrb[1].mxu1  ;;  %v595_v53 = vsel %vm591_vm2, %v1181_v51, -inf }
 0x267   : > { %596 = vmax.xlane.f32.xlu1 %v595_v53  ;;  %v592_v54 = vsel %vm591_vm2, %v493_v52, -inf }
 0x26b   : > { %593 = vmax.xlane.f32.xlu1 %v592_v54 }
 0x26d   : > { %v1188_v55 = vpop.f32.mrb[2].mxu1 }
 0x26e   : > { %v582_v56 = vpop.f32.mrb[3].mxu1  ;;  %v601_v57 = vsel %vm591_vm2, %v1188_v55, -inf }
 0x26f   : > { %602 = vmax.xlane.f32.xlu1 %v601_v57  ;;  %v598_v58 = vsel %vm591_vm2, %v582_v56, -inf }
 0x270   : > { %599 = vmax.xlane.f32.xlu0 %v598_v58 }
 0x280   : > { %1323 = vrot.lane.b32.xlu1 %v1312_v37, %s1403_s23 }
 0x284   : > { %1328 = vrot.lane.b32.xlu1 %v1317_v42, %s1403_s23 }
 0x2f4   : > { %v597_v59 = vpop.xlane.xlu1 %596 }
 0x2f5   : > { %v605_v60 = vsub.f32 %v1181_v51, %v597_v59 }
 0x2f7   : > { %v610_v61 = vmul.f32 1.442695, %v605_v60 }
 0x2f8   : > { %v594_v62 = vpop.xlane.xlu1 %593 }
 0x2f9   : > { %1332 = vpow2.f32 %v610_v61  ;;  %v604_v63 = vsub.f32 %v493_v52, %v594_v62 }
 0x2fb   : > { %v608_v0 = vmul.f32 1.442695, %v604_v63 }
 0x2fc   : > { %v603_v1 = vpop.xlane.xlu1 %602 }
 0x2fd   : > { %1334 = vpow2.f32 %v608_v0  ;;  %v607_v2 = vsub.f32 %v1188_v55, %v603_v1  ;;  %v600_v3 = vpop.xlane.xlu0 %599 }
 0x2fe   : > { %v606_v4 = vsub.f32 %v582_v56, %v600_v3 }
 0x2ff   : > { %v614_v5 = vmul.f32 1.442695, %v607_v2 }
 0x300   : > { %v612_v6 = vmul.f32 1.442695, %v606_v4  ;;  %v1324_v7 = vpop.permute.xlu1 %1323 }
 0x301   : > { %v1326_v8 = vunpack.i.h.bf16 %v1324_v7  ;;  %v1325_v9 = vunpack.i.l.bf16 %v1324_v7 }
 0x302   : > { %1336 = vpow2.f32 %v612_v6 }
 0x303   : > { %v1333_v10 = vpop.eup %1332  ;;  %1338 = vpow2.f32 %v614_v5  ;;  %v1261_v11 = vpack.c.bf16 %v1326_v8, %v1325_v9 }
 0x304   : > { %v1329_v12 = vpop.permute.xlu1 %1328  ;;  %v619_v13 = vsel %vm591_vm2, %v1333_v10, 0.0 }
 0x305   : > { %v1331_v14 = vunpack.i.h.bf16 %v1329_v12  ;;  %v1330_v15 = vunpack.i.l.bf16 %v1329_v12  ;;  %1262 = vmatprep.subr.bf16.mxu1 %v1261_v11  ;;  %620 = vadd.xlane.f32.xlu0 %v619_v13 }
 0x306   : > { %1264 = vmatpush3.bf16.msra.mxu1 %v1261_v11 }
 0x307   : > { %v1335_v16 = vpop.eup %1334  ;;  %v1265_v17 = vpack.c.bf16 %v1331_v14, %v1330_v15 }
 0x308   : > { %1193 = vmatprep.mubr.msk.f32.mxu1 %vm591_vm2, %v1335_v16  ;;  %v616_v18 = vsel %vm591_vm2, %v1335_v16, 0.0 }
 0x309   : > { %617 = vadd.xlane.f32.xlu1 %v616_v18  ;;  %1194 = vmatmul.mubr.msk.f32.vlgmr.msra.gmra.mrb[4].mxu1 %vm591_vm2, %v1333_v10 }
 0x30a   : > { %1266 = vmatprep.subr.bf16.mxu1 %v1265_v17 }
 0x30b   : > { %1268 = vmatpush3.bf16.msra.mxu1 %v1265_v17 }
 0x30c   : > { %v1337_v19 = vpop.eup %1336  ;;  %1270 = vmatprep.subr.bf16.mxu1 %v1269_v25 }
 0x30d   : > { %v1339_v20 = vpop.eup %1338  ;;  %1200 = vmatprep.mubr.msk.f32.mxu1 %vm591_vm2, %v1337_v19  ;;  %v622_v21 = vsel %vm591_vm2, %v1337_v19, 0.0 }
 0x30e   : > { %1201 = vmatmul.mubr.msk.f32.vlgmr.msra.gmra.mrb[6].mxu1 %vm591_vm2, %v1339_v20  ;;  %623 = vadd.xlane.f32.xlu0 %v622_v21  ;;  %v625_v22 = vsel %vm591_vm2, %v1339_v20, 0.0 }
 0x30f   : > { %1272 = vmatpush3.bf16.msra.mxu1 %v1269_v25 }
 0x310   : > { %1274 = vmatprep.subr.bf16.mxu1 %v1273_v28 }
 0x312   : > { %626 = vadd.xlane.f32.xlu0 %v625_v22 }
 0x313   : > { %1276 = vmatpush3.bf16.msra.mxu1 %v1273_v28 }
 0x392   : > { %v621_v29 = vpop.xlane.xlu0 %620 }
 0x396   : > { %v618_v30 = vpop.xlane.xlu1 %617 }
 0x397   : > { %1340 = vrcp.f32 %v618_v30 }
 0x398   : > { %1342 = vrcp.f32 %v621_v29 }
 0x39b   : > { %v624_v31 = vpop.xlane.xlu0 %623 }
 0x39c   : > { %1344 = vrcp.f32 %v624_v31 }
 0x39f   : > { %v627_v32 = vpop.xlane.xlu0 %626 }
 0x3a0   : > { %1346 = vrcp.f32 %v627_v32 }
 0x3a1   : > { %v1341_v34 = vpop.eup %1340 }
 0x3a2   : > { %v1343_v36 = vpop.eup %1342 }
 0x3a6   : > { %v1345_v40 = vpop.eup %1344 }
 0x3aa   : > { %v1347_v42 = vpop.eup %1346 }
 0x3dc   : > { %v1195_v33 = vpop.f32.mrb[4].mxu1 }
 0x3dd   : > { %v710_v35 = vpop.f32.mrb[5].mxu1  ;;  %v807_v38 = vmul.f32 %v1343_v36, %v1195_v33 }
 0x3de   : > { %v806_v37 = vmul.f32 %v1341_v34, %v710_v35 }
 0x3e0   : > { %1211 = vmatprep.mubr.msk.f32.mxu1 %vm418_vm0, %v806_v37 }
 0x3e1   : > { %v1202_v39 = vpop.f32.mrb[6].mxu1  ;;  %1212 = vmatmul.mubr.msk.f32.vlgmr.msra.gmra.mrb[8].mxu1 %vm418_vm0, %v807_v38 }
 0x3e2   : > { %v797_v41 = vpop.f32.mrb[7].mxu1  ;;  %v809_v44 = vmul.f32 %v1347_v42, %v1202_v39 }
 0x3e3   : > { %v808_v43 = vmul.f32 %v1345_v40, %v797_v41 }
 0x3e5   : > { %1214 = vmatprep.mubr.msk.f32.mxu1 %vm418_vm0, %v808_v43 }
 0x3e6   : > { %1215 = vmatmul.mubr.msk.f32.gmra.mrb[10].mxu1 %vm418_vm0, %v809_v44 }
 0x4b4   : > { %v1213_v45 = vpop.f32.mrb[8].mxu1  ;;  %913 = sbr.rel (%p1065_p5) target bundleno = 1214 (0x4be), region = 48 }
 0x4b5   : > { %v892_v46 = vpop.f32.mrb[9].mxu1  ;;  %v922_v51 = vadd.f32 (!%p1065_p5), %v1213_v45, %v1084_v49 }
 0x4b6   : > { %v921_v50 = vadd.f32 (!%p1065_p5), %v1084_v49, %v892_v46 }
 0x4b7   : > { %926 = vst [vmem:[#allocation3 + $0x8] sm:$0xff] (!%p1065_p5), %v922_v51 }
 0x4b8   : > { %925 = vst [vmem:[#allocation3] sm:$0xff] (!%p1065_p5), %v921_v50 }
 0x4b9   : > { %v1216_v47 = vpop.f32.mrb[10].mxu1 }
 0x4ba   : > { %v902_v48 = vpop.f32.mrb[11].mxu1  ;;  %v924_v53 = vadd.f32 (!%p1065_p5), %v1216_v47, %v1084_v49 }
 0x4bb   : > { %v923_v52 = vadd.f32 %v1084_v49, %v902_v48 }
 0x4bc   : > { %928 = vst [vmem:[#allocation3 + $0x18] sm:$0xff] %v924_v53 }
 0x4bd   : > { %927 = vst [vmem:[#allocation3 + $0x10] sm:$0xff] %v923_v52 }
 0x4be PF: > { %p1085_p6 = scmp.le.s32.totalorder %s1392_s18, 0 }
 0x4c0   : > { %932 = sbr.rel (%p1085_p6) target bundleno = 1224 (0x4c8), region = 52 }
 0x4c1   : > { %v934_v55 = vld [vmem:[#allocation3 + $0x8] sm:$0xff] (!%p1085_p6) }
 0x4c2   : > { %v933_v54 = vld [vmem:[#allocation3] sm:$0xff] (!%p1085_p6)  ;;  %v938_v58 = vadd.f32 (!%p1085_p6), %v1213_v45, %v934_v55 }
 0x4c3   : > { %v937_v57 = vadd.f32 (!%p1085_p6), %v933_v54, %v892_v46  ;;  %v936_v60 = vld [vmem:[#allocation3 + $0x18] sm:$0xff] (!%p1085_p6) }
 0x4c4   : > { %v935_v56 = vld [vmem:[#allocation3 + $0x10] sm:$0xff] (!%p1085_p6)  ;;  %v940_v61 = vadd.f32 (!%p1085_p6), %v1216_v47, %v936_v60  ;;  %942 = vst [vmem:[#allocation3 + $0x8] sm:$0xff] (!%p1085_p6), %v938_v58 }
 0x4c5   : > { %v939_v59 = vadd.f32 (!%p1085_p6), %v935_v56, %v902_v48  ;;  %941 = vst [vmem:[#allocation3] sm:$0xff] (!%p1085_p6), %v937_v57 }
 0x4c6   : > { %944 = vst [vmem:[#allocation3 + $0x18] sm:$0xff] (!%p1085_p6), %v940_v61 }
 0x4c7   : > { %943 = vst [vmem:[#allocation3 + $0x10] sm:$0xff] %v939_v59 }
 0x4c8 PF: > { %p1086_p7 = scmp.ne.s32.totalorder %s1392_s18, 3 }
 0x4ca   : > { %948 = sbr.rel (%p1086_p7) target bundleno = 1233 (0x4d1), region = 56 }
 0x4cc   : > { %v950_v63 = vld [vmem:[#allocation3 + $0x8] sm:$0xff] (!%p1086_p7) }
 0x4cd   : > { %v949_v62 = vld [vmem:[#allocation3] sm:$0xff] (!%p1086_p7)  ;;  %954 = vst [vmem:[#allocation4 + $0x8] sm:$0xff] (!%p1086_p7), %v950_v63 }
 0x4ce   : > { %v951_v0 = vld [vmem:[#allocation3 + $0x10] sm:$0xff] (!%p1086_p7)  ;;  %953 = vst [vmem:[#allocation4] sm:$0xff] (!%p1086_p7), %v949_v62  ;;  %v952_v1 = vld [vmem:[#allocation3 + $0x18] sm:$0xff] (!%p1086_p7) }
 0x4cf   : > { %955 = vst [vmem:[#allocation4 + $0x10] sm:$0xff] (!%p1086_p7), %v951_v0  ;;  %956 = vst [vmem:[#allocation4 + $0x18] sm:$0xff] (!%p1086_p7), %v952_v1 }
 0x4d1 PF: > { %p1549_p8 = scmp.eq.s32.totalorder %s1056_s21, 3  ;;  %s1404_s30 = smov [#allocation4]  }
 0x4d2   : > { %s967_s6 = sshll.u32 %s1404_s30, 4  ;;  %s968_s6 = int_to_ptr.vmem [resolvable:$true] %s967_s6 }
 0x4d3   : > { %s1348_s18 = scalar_lea.vmem %s968_s6, 512  ;;  %p1355_p12 = scmp.lt.s32.totalorder %s968_s6, %s968_s6 }
 0x4d4   : > { %p1349_p9 = scmp.ne.s32.totalorder %s968_s6, %s1348_s18  ;;  %p1356_p13 = scmp.lt.s32.totalorder %s1348_s18, %s1348_s18 }
 0x4d6   : > { %p1350_p10 = pnand %p1349_p9, %p1549_p8  ;;  %p1357_p0 = por %p1356_p13, %p1355_p12 }
 0x4d8   : > { %p1351_p11 = pneg %p1350_p10 }
 0x4da   : > { %p1358_p1 = pnand %p1357_p0, %p1351_p11 }
 0x4dc   : > { %1361 = shalt.err (!%p1358_p1)
}
 0x4dd   : > { %s1362_s21 = scalar_lea.hbm %s1589_s5, 512 }
 0x4de   : > { %p1363_p2 = scmp.ne.s32.totalorder %s1589_s5, %s1362_s21  ;;  %p1368_p5 = scmp.lt.u32.totalorder %s1362_s21, %s1589_s5 }
 0x4e0   : > { %p1364_p3 = pnand %p1363_p2, %p1549_p8 }
 0x4e2   : > { %p1365_p4 = pneg %p1364_p3 }
 0x4e4   : > { %p1370_p6 = pnand %p1368_p5, %p1365_p4 }
 0x4e6   : > { %1373 = shalt.err (!%p1370_p6)
}
 0x4e7   : > { %s1405_s13 = smov 128   ;;  %s1406_s14 = smov 8  }
 0x4e8   : > { %1278 = dma.vmem_to_hbm [thread:$0]  (%p1549_p8), %s968_s6, 512, %s1589_s5, [#allocation5], %s1405_s13, %s1405_s13, %s1406_s14  }
 0x4e9   : > { %1387 = dma.done.wait (%p1549_p8), [#allocation5], 512  }
 0x4ea   : > { %1389 = vsyncadd (%p1549_p8), [#allocation5], 4294966784 }
 0x4eb PF: > { %s16_s20 = sadd.s32 1, %s1400_s20   ;;  %s1591_s18 = smov %s1396_s19 }
 0x4ec   : > { %p13_p7 = scmp.ge.s32.totalorder %s16_s20, 6   ;;  %s1592_s19 = smov %s1594_s22 }
 0x4ee   :  { %15 = sbr.rel (!%p13_p7) target bundleno = 2 (0x2), region = 93 }
 0x4f5   :  { %983 = vsyncpa [#allocation5], 1 }
 0x4f6   :  { %985 = vsyncpa [#allocation5 + $0x1], 1 }

</bundles_post_ra>
